<compile_context>
chip_gen: v6e
topology: v6e:2x2x1
jax: 0.10.0
libtpu: 0.0.40
codegen_flags: <defaults>
</compile_context>

<pallas_src>
import functools

import jax
import jax.numpy as jnp
from jax import lax
from jax.experimental import pallas as pl
from jax.experimental.pallas import tpu as pltpu


def _pick_q_tile(n, max_q_tile):
    """Largest query tile <= max_q_tile that divides N (multiple of 8 if tiled)."""
    if n <= max_q_tile:
        return n
    for t in range(max_q_tile, 7, -1):
        if n % t == 0 and t % 8 == 0:
            return t
    return n  # fallback: no tiling


def _mhsa_kernel(x_ref, wq_ref, wkv_ref, bq_ref, bkv_ref,
                 out_ref, attn_ref, kv_sc,
                 *, num_heads, q_tile, mxu_dtype):
    # x_ref   : (1, N, D)      full sequence of current batch element (mxu_dtype)
    # wq_ref  : (D, D)         scale-folded Q weight (mxu_dtype, VMEM-resident)
    # wkv_ref : (D, 2D)        fused K|V weight     (mxu_dtype, VMEM-resident)
    # bq_ref  : (1, D)         scale-folded Q bias  (f32)
    # bkv_ref : (1, 2D)        fused K|V bias       (f32)
    # out_ref : (1, tq, D)     merged multi-head output tile
    # attn_ref: (1, H, tq, N)  attention probabilities tile
    # kv_sc   : (N, 2D)        persistent K|V cache for the current batch element
    qt = pl.program_id(1)
    H = num_heads
    tq = q_tile
    N = x_ref.shape[1]
    D = wq_ref.shape[0]
    hd = D // H

    # First query tile of each batch element: one fused K|V projection GEMM
    # over the full sequence, cached in VMEM scratch for the remaining tiles.
    @pl.when(qt == 0)
    def _():
        x_full = x_ref[0]                                            # (N, D)
        kv = jnp.dot(x_full, wkv_ref[...],
                     preferred_element_type=jnp.float32) + bkv_ref[...]
        kv_sc[...] = kv.astype(kv_sc.dtype)

    # Q projection for the current query tile (1/sqrt(head_dim) pre-folded
    # into Wq/bq in the wrapper).
    q_start = pl.multiple_of(qt * tq, tq)
    xq = x_ref[0, pl.ds(q_start, tq), :]                             # (tq, D)
    q = (jnp.dot(xq, wq_ref[...], preferred_element_type=jnp.float32)
         + bq_ref[...]).astype(mxu_dtype)                            # (tq, D)

    kv = kv_sc[...]                                                  # (N, 2D)

    head_outs = []
    for h in range(H):                                  # static, unrolled
        ksl = slice(h * hd, (h + 1) * hd)
        vsl = slice(D + h * hd, D + (h + 1) * hd)
        qh = q[:, ksl]                                               # (tq, hd)
        kh = kv[:, ksl]                                              # (N, hd)
        vh = kv[:, vsl]                                              # (N, hd)

        # QK^T without materializing a K transpose (contract over hd).
        s = lax.dot_general(qh, kh, (((1,), (1,)), ((), ())),
                            preferred_element_type=jnp.float32)      # (tq, N)

        # Numerically-stable softmax, kept in f32; exact reciprocal since the
        # probabilities are an explicit output (rows sum to 1).
        m = jnp.max(s, axis=-1, keepdims=True)
        e = jnp.exp(s - m)
        denom = jnp.sum(e, axis=-1, keepdims=True)
        attn = e * pl.reciprocal(denom)                              # (tq, N)

        # Dropout is identity (eval mode).
        head_outs.append(jnp.dot(attn.astype(mxu_dtype), vh,
                                 preferred_element_type=jnp.float32))
        attn_ref[0, h, :, :] = attn.astype(attn_ref.dtype)

    # Single lane-dense store of the merged (tq, D) output (no transpose).
    out_ref[0] = jnp.concatenate(head_outs, axis=-1).astype(out_ref.dtype)


def multiheaded_self_attention(x, wq, wk, wv, bq, bk, bv, num_heads,
                               mxu_dtype=jnp.bfloat16,
                               attn_dtype=jnp.bfloat16,
                               max_q_tile=256):
    """x: (B, N, D).  w*: (D, D) stored so that y = x @ w + b.  b*: (D,).

    Returns (out (B, N, D) in x.dtype, attn (B, H, N, N) in attn_dtype).
    """
    B, N, D = x.shape
    H = num_heads
    assert D % H == 0, "latent_vec_dim must be divisible by num_heads"
    hd = D // H
    inv_scale = 1.0 / float(hd) ** 0.5

    # Fold 1/sqrt(head_dim) into the Q projection, fuse K|V weights/biases,
    # and store MXU operands (x, weights) in mxu_dtype.
    wq_s = (wq.astype(jnp.float32) * inv_scale).astype(mxu_dtype)
    bq_s = (bq.astype(jnp.float32) * inv_scale).reshape(1, D)
    wkv = jnp.concatenate([wk, wv], axis=1).astype(mxu_dtype)          # (D, 2D)
    bkv = jnp.concatenate([bk, bv], axis=0).astype(jnp.float32).reshape(1, 2 * D)
    x_mxu = x.astype(mxu_dtype)

    tq = _pick_q_tile(N, max_q_tile)
    n_qt = N // tq

    kernel = functools.partial(_mhsa_kernel, num_heads=H, q_tile=tq,
                               mxu_dtype=mxu_dtype)

    # Explicit VMEM budget: resident weights + double-buffered blocks + K|V
    # scratch + f32 temporaries, with headroom; clamped for v7x (64 MiB phys).
    f32b = 4
    mxub = jnp.dtype(mxu_dtype).itemsize
    need = (2 * (D * D + 2 * D * D) * mxub                 # weights
            + 2 * 3 * D * f32b                             # biases
            + 2 * N * D * mxub                             # x block
            + 2 * tq * D * jnp.dtype(x.dtype).itemsize     # out block
            + 2 * H * tq * N * jnp.dtype(attn_dtype).itemsize  # attn block
            + 2 * N * D * mxub                             # K|V scratch
            + 3 * N * D * f32b                             # projection temporaries
            + 4 * tq * N * f32b)                           # softmax temporaries
    vmem_limit = int(min(max(2 * need, 32 << 20), 60 << 20))

    out, attn = pl.pallas_call(
        kernel,
        out_shape=(
            jax.ShapeDtypeStruct((B, N, D), x.dtype),
            jax.ShapeDtypeStruct((B, H, N, N), attn_dtype),
        ),
        grid_spec=pltpu.PrefetchScalarGridSpec(
            num_scalar_prefetch=0,
            grid=(B, n_qt),
            in_specs=[
                pl.BlockSpec((1, N, D), lambda b, q: (b, 0, 0)),   # x (full seq)
                pl.BlockSpec((D, D), lambda b, q: (0, 0)),         # Wq (scaled)
                pl.BlockSpec((D, 2 * D), lambda b, q: (0, 0)),     # Wk|Wv
                pl.BlockSpec((1, D), lambda b, q: (0, 0)),         # bq (scaled)
                pl.BlockSpec((1, 2 * D), lambda b, q: (0, 0)),     # bk|bv
            ],
            out_specs=[
                pl.BlockSpec((1, tq, D), lambda b, q: (b, q, 0)),        # out
                pl.BlockSpec((1, H, tq, N), lambda b, q: (b, 0, q, 0)),  # attn
            ],
            scratch_shapes=[pltpu.VMEM((N, 2 * D), mxu_dtype)],
        ),
        compiler_params=pltpu.CompilerParams(
            dimension_semantics=("parallel", "arbitrary"),
            vmem_limit_bytes=vmem_limit),
    )(x_mxu, wq_s, wkv, bq_s, bkv)
    return out, attn


def _reference(x, wq, wk, wv, bq, bk, bv, num_heads):
    B, N, D = x.shape
    H = num_heads
    hd = D // H
    q = (x @ wq + bq).reshape(B, N, H, hd).transpose(0, 2, 1, 3)
    k = (x @ wk + bk).reshape(B, N, H, hd).transpose(0, 2, 3, 1)
    v = (x @ wv + bv).reshape(B, N, H, hd).transpose(0, 2, 1, 3)
    attn = jax.nn.softmax((q @ k) / jnp.sqrt(jnp.float32(hd)), axis=-1)
    out = (attn @ v).transpose(0, 2, 1, 3).reshape(B, N, D)
    return out, attn


def _make_inputs(key, B, N, D):
    kx, k1, k2, k3, k4, k5, k6 = jax.random.split(key, 7)
    scale = 1.0 / jnp.sqrt(jnp.float32(D))
    x = jax.random.normal(kx, (B, N, D), dtype=jnp.float32)
    wq = jax.random.normal(k1, (D, D), dtype=jnp.float32) * scale
    wk = jax.random.normal(k2, (D, D), dtype=jnp.float32) * scale
    wv = jax.random.normal(k3, (D, D), dtype=jnp.float32) * scale
    bq = jax.random.normal(k4, (D,), dtype=jnp.float32) * scale
    bk = jax.random.normal(k5, (D,), dtype=jnp.float32) * scale
    bv = jax.random.normal(k6, (D,), dtype=jnp.float32) * scale
    return x, wq, wk, wv, bq, bk, bv


if __name__ == "__main__":
    key = jax.random.PRNGKey(0)
    k_small, k_mid = jax.random.split(key, 2)

    # --- Test 1: small shapes, f32 MXU path, tight check ---------------------
    B, N, D, H = 2, 8, 32, 4
    x, wq, wk, wv, bq, bk, bv = _make_inputs(k_small, B, N, D)
    ref_out, ref_attn = _reference(x, wq, wk, wv, bq, bk, bv, H)

    out32, attn32 = multiheaded_self_attention(
        x, wq, wk, wv, bq, bk, bv, H,
        mxu_dtype=jnp.float32, attn_dtype=jnp.float32)
    out32 = jax.block_until_ready(out32)
    attn32 = jax.block_until_ready(attn32)
    assert out32.shape == (B, N, D) and attn32.shape == (B, H, N, N)
    assert jnp.allclose(out32, ref_out, atol=5e-3, rtol=5e-3)
    assert jnp.allclose(attn32, ref_attn, atol=5e-3, rtol=5e-3)

    # --- Test 2: small shapes, bf16 fast path (default), loose check ---------
    out16, attn16 = multiheaded_self_attention(x, wq, wk, wv, bq, bk, bv, H)
    out16 = jax.block_until_ready(out16)
    attn16 = jax.block_until_ready(attn16)
    assert out16.shape == (B, N, D) and attn16.shape == (B, H, N, N)
    assert jnp.allclose(out16.astype(jnp.float32), ref_out, atol=5e-2, rtol=5e-2)
    assert jnp.allclose(attn16.astype(jnp.float32), ref_attn, atol=5e-2, rtol=5e-2)

    # --- Test 3: exercises lane-dense tiles + query tiling (N // tq = 2) -----
    B2, N2, D2, H2 = 1, 256, 128, 2
    x2, wq2, wk2, wv2, bq2, bk2, bv2 = _make_inputs(k_mid, B2, N2, D2)
    ref_out2, ref_attn2 = _reference(x2, wq2, wk2, wv2, bq2, bk2, bv2, H2)
    out_t, attn_t = multiheaded_self_attention(
        x2, wq2, wk2, wv2, bq2, bk2, bv2, H2,
        mxu_dtype=jnp.float32, attn_dtype=jnp.float32, max_q_tile=128)
    out_t = jax.block_until_ready(out_t)
    attn_t = jax.block_until_ready(attn_t)
    assert out_t.shape == (B2, N2, D2) and attn_t.shape == (B2, H2, N2, N2)
    assert jnp.allclose(out_t, ref_out2, atol=1e-2, rtol=1e-2)
    assert jnp.allclose(attn_t, ref_attn2, atol=1e-2, rtol=1e-2)

    print("KERNEL_OK")
</pallas_src>

<mosaic_0001>
module attributes {stable_mosaic.version = 11 : i64} {
  func.func @_mhsa_kernel(%arg0: i32, %arg1: i32, %arg2: memref<1x8x32xf32, #tpu.memory_space<vmem>>, %arg3: memref<32x32xf32, #tpu.memory_space<vmem>>, %arg4: memref<32x64xf32, #tpu.memory_space<vmem>>, %arg5: memref<1x32xf32, #tpu.memory_space<vmem>>, %arg6: memref<1x64xf32, #tpu.memory_space<vmem>>, %arg7: memref<1x8x32xf32, #tpu.memory_space<vmem>>, %arg8: memref<1x4x8x8xf32, #tpu.memory_space<vmem>>, %arg9: memref<8x64xf32, #tpu.memory_space<vmem>>) attributes {dimension_semantics = [#tpu.dimension_semantics<parallel>, #tpu.dimension_semantics<arbitrary>], iteration_bounds = array<i64: 2, 1>, scalar_prefetch = 0 : i64, scratch_operands = 1 : i64, tpu.core_type = #tpu.core_type<tc>, window_params = [{transform_indices = @transform_0, window_bounds = array<i64: 1, 8, 32>}, {pipeline_mode = #tpu.pipeline_mode<synchronous>, transform_indices = @transform_1, window_bounds = array<i64: 32, 32>}, {pipeline_mode = #tpu.pipeline_mode<synchronous>, transform_indices = @transform_2, window_bounds = array<i64: 32, 64>}, {pipeline_mode = #tpu.pipeline_mode<synchronous>, transform_indices = @transform_3, window_bounds = array<i64: 1, 32>}, {pipeline_mode = #tpu.pipeline_mode<synchronous>, transform_indices = @transform_4, window_bounds = array<i64: 1, 64>}, {transform_indices = @transform_5, window_bounds = array<i64: 1, 8, 32>}, {transform_indices = @transform_6, window_bounds = array<i64: 1, 4, 8, 8>}]} {
    %c0_i32 = arith.constant 0 : i32
    %0 = arith.cmpi eq, %arg1, %c0_i32 : i32
    %1 = arith.extui %0 : i1 to i32
    %c0_i32_0 = arith.constant 0 : i32
    %2 = arith.cmpi ne, %1, %c0_i32_0 : i32
    scf.if %2 {
      %c0_40 = arith.constant 0 : index
      %c0_41 = arith.constant 0 : index
      %c0_42 = arith.constant 0 : index
      %90 = vector.load %arg2[%c0_40, %c0_41, %c0_42] : memref<1x8x32xf32, #tpu.memory_space<vmem>>, vector<1x8x32xf32>
      %91 = vector.shape_cast %90 : vector<1x8x32xf32> to vector<8x32xf32>
      %c0_43 = arith.constant 0 : index
      %c0_44 = arith.constant 0 : index
      %92 = vector.load %arg4[%c0_43, %c0_44] : memref<32x64xf32, #tpu.memory_space<vmem>>, vector<32x64xf32>
      %cst_45 = arith.constant dense<0.000000e+00> : vector<8x64xf32>
      %93 = tpu.matmul %91, %92, %cst_45 {dimension_numbers = #tpu.dot_dimension_numbers<[1], [0], [0], [1], [0, 0, 1, 1], [], []>} : vector<8x32xf32>, vector<32x64xf32>, vector<8x64xf32> -> vector<8x64xf32>
      %c0_46 = arith.constant 0 : index
      %c0_47 = arith.constant 0 : index
      %94 = vector.load %arg6[%c0_46, %c0_47] : memref<1x64xf32, #tpu.memory_space<vmem>>, vector<1x64xf32>
      %95 = vector.broadcast %94 : vector<1x64xf32> to vector<8x64xf32>
      %96 = arith.addf %93, %95 : vector<8x64xf32>
      %c0_48 = arith.constant 0 : index
      %c0_49 = arith.constant 0 : index
      %97 = vector.load %arg9[%c0_48, %c0_49] : memref<8x64xf32, #tpu.memory_space<vmem>>, vector<8x64xf32>
      tpu.vector_store %arg9[%c0_48, %c0_49], %96 {strides = array<i32>} : memref<8x64xf32, #tpu.memory_space<vmem>>, vector<8x64xf32>,
    } else {
    }
    %c8_i32 = arith.constant 8 : i32
    %3 = arith.muli %arg1, %c8_i32 : i32
    %4 = tpu.assume_multiple %3, 8 : i32
    %c0 = arith.constant 0 : index
    %5 = arith.index_cast %4 : i32 to index
    %c0_1 = arith.constant 0 : index
    %6 = vector.load %arg2[%c0, %5, %c0_1] : memref<1x8x32xf32, #tpu.memory_space<vmem>>, vector<1x8x32xf32>
    %7 = vector.shape_cast %6 : vector<1x8x32xf32> to vector<8x32xf32>
    %c0_2 = arith.constant 0 : index
    %c0_3 = arith.constant 0 : index
    %8 = vector.load %arg3[%c0_2, %c0_3] : memref<32x32xf32, #tpu.memory_space<vmem>>, vector<32x32xf32>
    %cst = arith.constant dense<0.000000e+00> : vector<8x32xf32>
    %9 = tpu.matmul %7, %8, %cst {dimension_numbers = #tpu.dot_dimension_numbers<[1], [0], [0], [1], [0, 0, 1, 1], [], []>} : vector<8x32xf32>, vector<32x32xf32>, vector<8x32xf32> -> vector<8x32xf32>
    %c0_4 = arith.constant 0 : index
    %c0_5 = arith.constant 0 : index
    %10 = vector.load %arg5[%c0_4, %c0_5] : memref<1x32xf32, #tpu.memory_space<vmem>>, vector<1x32xf32>
    %11 = vector.broadcast %10 : vector<1x32xf32> to vector<8x32xf32>
    %12 = arith.addf %9, %11 : vector<8x32xf32>
    %c0_6 = arith.constant 0 : index
    %c0_7 = arith.constant 0 : index
    %13 = vector.load %arg9[%c0_6, %c0_7] : memref<8x64xf32, #tpu.memory_space<vmem>>, vector<8x64xf32>
    %14 = vector.extract_strided_slice %12 {offsets = [0, 0], sizes = [8, 8], strides = [1, 1]} : vector<8x32xf32> to vector<8x8xf32>
    %15 = vector.extract_strided_slice %13 {offsets = [0, 0], sizes = [8, 8], strides = [1, 1]} : vector<8x64xf32> to vector<8x8xf32>
    %16 = vector.extract_strided_slice %13 {offsets = [0, 32], sizes = [8, 8], strides = [1, 1]} : vector<8x64xf32> to vector<8x8xf32>
    %cst_8 = arith.constant dense<0.000000e+00> : vector<8x8xf32>
    %17 = tpu.matmul %14, %15, %cst_8 {dimension_numbers = #tpu.dot_dimension_numbers<[1], [1], [0], [0], [0, 0, 1, 0], [], []>} : vector<8x8xf32>, vector<8x8xf32>, vector<8x8xf32> -> vector<8x8xf32>
    %cst_9 = arith.constant dense<0xFF800000> : vector<8xf32>
    %18 = vector.multi_reduction <maximumf>, %17, %cst_9 [1] : vector<8x8xf32> to vector<8xf32>
    %19 = vector.shape_cast %18 : vector<8xf32> to vector<8x1xf32>
    %20 = vector.broadcast %19 : vector<8x1xf32> to vector<8x8xf32>
    %21 = arith.subf %17, %20 : vector<8x8xf32>
    %22 = math.exp %21 : vector<8x8xf32>
    %cst_10 = arith.constant dense<0.000000e+00> : vector<8xf32>
    %23 = vector.multi_reduction <add>, %22, %cst_10 [1] : vector<8x8xf32> to vector<8xf32>
    %24 = vector.shape_cast %23 : vector<8xf32> to vector<8x1xf32>
    %25 = tpu.reciprocal %24 : vector<8x1xf32> -> vector<8x1xf32>
    %26 = vector.broadcast %25 : vector<8x1xf32> to vector<8x8xf32>
    %27 = arith.mulf %22, %26 : vector<8x8xf32>
    %cst_11 = arith.constant dense<0.000000e+00> : vector<8x8xf32>
    %28 = tpu.matmul %27, %16, %cst_11 {dimension_numbers = #tpu.dot_dimension_numbers<[1], [0], [0], [1], [0, 0, 1, 1], [], []>} : vector<8x8xf32>, vector<8x8xf32>, vector<8x8xf32> -> vector<8x8xf32>
    %c0_12 = arith.constant 0 : index
    %c0_13 = arith.constant 0 : index
    %c0_14 = arith.constant 0 : index
    %c0_15 = arith.constant 0 : index
    %29 = vector.load %arg8[%c0_12, %c0_13, %c0_14, %c0_15] : memref<1x4x8x8xf32, #tpu.memory_space<vmem>>, vector<1x1x8x8xf32>
    %30 = vector.shape_cast %29 : vector<1x1x8x8xf32> to vector<8x8xf32>
    %31 = vector.shape_cast %27 : vector<8x8xf32> to vector<1x1x8x8xf32>
    tpu.vector_store %arg8[%c0_12, %c0_13, %c0_14, %c0_15], %31 {strides = array<i32>} : memref<1x4x8x8xf32, #tpu.memory_space<vmem>>, vector<1x1x8x8xf32>,
    %32 = vector.extract_strided_slice %12 {offsets = [0, 8], sizes = [8, 8], strides = [1, 1]} : vector<8x32xf32> to vector<8x8xf32>
    %33 = vector.extract_strided_slice %13 {offsets = [0, 8], sizes = [8, 8], strides = [1, 1]} : vector<8x64xf32> to vector<8x8xf32>
    %34 = vector.extract_strided_slice %13 {offsets = [0, 40], sizes = [8, 8], strides = [1, 1]} : vector<8x64xf32> to vector<8x8xf32>
    %cst_16 = arith.constant dense<0.000000e+00> : vector<8x8xf32>
    %35 = tpu.matmul %32, %33, %cst_16 {dimension_numbers = #tpu.dot_dimension_numbers<[1], [1], [0], [0], [0, 0, 1, 0], [], []>} : vector<8x8xf32>, vector<8x8xf32>, vector<8x8xf32> -> vector<8x8xf32>
    %cst_17 = arith.constant dense<0xFF800000> : vector<8xf32>
    %36 = vector.multi_reduction <maximumf>, %35, %cst_17 [1] : vector<8x8xf32> to vector<8xf32>
    %37 = vector.shape_cast %36 : vector<8xf32> to vector<8x1xf32>
    %38 = vector.broadcast %37 : vector<8x1xf32> to vector<8x8xf32>
    %39 = arith.subf %35, %38 : vector<8x8xf32>
    %40 = math.exp %39 : vector<8x8xf32>
    %cst_18 = arith.constant dense<0.000000e+00> : vector<8xf32>
    %41 = vector.multi_reduction <add>, %40, %cst_18 [1] : vector<8x8xf32> to vector<8xf32>
    %42 = vector.shape_cast %41 : vector<8xf32> to vector<8x1xf32>
    %43 = tpu.reciprocal %42 : vector<8x1xf32> -> vector<8x1xf32>
    %44 = vector.broadcast %43 : vector<8x1xf32> to vector<8x8xf32>
    %45 = arith.mulf %40, %44 : vector<8x8xf32>
    %cst_19 = arith.constant dense<0.000000e+00> : vector<8x8xf32>
    %46 = tpu.matmul %45, %34, %cst_19 {dimension_numbers = #tpu.dot_dimension_numbers<[1], [0], [0], [1], [0, 0, 1, 1], [], []>} : vector<8x8xf32>, vector<8x8xf32>, vector<8x8xf32> -> vector<8x8xf32>
    %c0_20 = arith.constant 0 : index
    %c1 = arith.constant 1 : index
    %c0_21 = arith.constant 0 : index
    %c0_22 = arith.constant 0 : index
    %47 = vector.load %arg8[%c0_20, %c1, %c0_21, %c0_22] : memref<1x4x8x8xf32, #tpu.memory_space<vmem>>, vector<1x1x8x8xf32>
    %48 = vector.shape_cast %47 : vector<1x1x8x8xf32> to vector<8x8xf32>
    %49 = vector.shape_cast %45 : vector<8x8xf32> to vector<1x1x8x8xf32>
    tpu.vector_store %arg8[%c0_20, %c1, %c0_21, %c0_22], %49 {strides = array<i32>} : memref<1x4x8x8xf32, #tpu.memory_space<vmem>>, vector<1x1x8x8xf32>,
    %50 = vector.extract_strided_slice %12 {offsets = [0, 16], sizes = [8, 8], strides = [1, 1]} : vector<8x32xf32> to vector<8x8xf32>
    %51 = vector.extract_strided_slice %13 {offsets = [0, 16], sizes = [8, 8], strides = [1, 1]} : vector<8x64xf32> to vector<8x8xf32>
    %52 = vector.extract_strided_slice %13 {offsets = [0, 48], sizes = [8, 8], strides = [1, 1]} : vector<8x64xf32> to vector<8x8xf32>
    %cst_23 = arith.constant dense<0.000000e+00> : vector<8x8xf32>
    %53 = tpu.matmul %50, %51, %cst_23 {dimension_numbers = #tpu.dot_dimension_numbers<[1], [1], [0], [0], [0, 0, 1, 0], [], []>} : vector<8x8xf32>, vector<8x8xf32>, vector<8x8xf32> -> vector<8x8xf32>
    %cst_24 = arith.constant dense<0xFF800000> : vector<8xf32>
    %54 = vector.multi_reduction <maximumf>, %53, %cst_24 [1] : vector<8x8xf32> to vector<8xf32>
    %55 = vector.shape_cast %54 : vector<8xf32> to vector<8x1xf32>
    %56 = vector.broadcast %55 : vector<8x1xf32> to vector<8x8xf32>
    %57 = arith.subf %53, %56 : vector<8x8xf32>
    %58 = math.exp %57 : vector<8x8xf32>
    %cst_25 = arith.constant dense<0.000000e+00> : vector<8xf32>
    %59 = vector.multi_reduction <add>, %58, %cst_25 [1] : vector<8x8xf32> to vector<8xf32>
    %60 = vector.shape_cast %59 : vector<8xf32> to vector<8x1xf32>
    %61 = tpu.reciprocal %60 : vector<8x1xf32> -> vector<8x1xf32>
    %62 = vector.broadcast %61 : vector<8x1xf32> to vector<8x8xf32>
    %63 = arith.mulf %58, %62 : vector<8x8xf32>
    %cst_26 = arith.constant dense<0.000000e+00> : vector<8x8xf32>
    %64 = tpu.matmul %63, %52, %cst_26 {dimension_numbers = #tpu.dot_dimension_numbers<[1], [0], [0], [1], [0, 0, 1, 1], [], []>} : vector<8x8xf32>, vector<8x8xf32>, vector<8x8xf32> -> vector<8x8xf32>
    %c0_27 = arith.constant 0 : index
    %c2 = arith.constant 2 : index
    %c0_28 = arith.constant 0 : index
    %c0_29 = arith.constant 0 : index
    %65 = vector.load %arg8[%c0_27, %c2, %c0_28, %c0_29] : memref<1x4x8x8xf32, #tpu.memory_space<vmem>>, vector<1x1x8x8xf32>
    %66 = vector.shape_cast %65 : vector<1x1x8x8xf32> to vector<8x8xf32>
    %67 = vector.shape_cast %63 : vector<8x8xf32> to vector<1x1x8x8xf32>
    tpu.vector_store %arg8[%c0_27, %c2, %c0_28, %c0_29], %67 {strides = array<i32>} : memref<1x4x8x8xf32, #tpu.memory_space<vmem>>, vector<1x1x8x8xf32>,
    %68 = vector.extract_strided_slice %12 {offsets = [0, 24], sizes = [8, 8], strides = [1, 1]} : vector<8x32xf32> to vector<8x8xf32>
    %69 = vector.extract_strided_slice %13 {offsets = [0, 24], sizes = [8, 8], strides = [1, 1]} : vector<8x64xf32> to vector<8x8xf32>
    %70 = vector.extract_strided_slice %13 {offsets = [0, 56], sizes = [8, 8], strides = [1, 1]} : vector<8x64xf32> to vector<8x8xf32>
    %cst_30 = arith.constant dense<0.000000e+00> : vector<8x8xf32>
    %71 = tpu.matmul %68, %69, %cst_30 {dimension_numbers = #tpu.dot_dimension_numbers<[1], [1], [0], [0], [0, 0, 1, 0], [], []>} : vector<8x8xf32>, vector<8x8xf32>, vector<8x8xf32> -> vector<8x8xf32>
    %cst_31 = arith.constant dense<0xFF800000> : vector<8xf32>
    %72 = vector.multi_reduction <maximumf>, %71, %cst_31 [1] : vector<8x8xf32> to vector<8xf32>
    %73 = vector.shape_cast %72 : vector<8xf32> to vector<8x1xf32>
    %74 = vector.broadcast %73 : vector<8x1xf32> to vector<8x8xf32>
    %75 = arith.subf %71, %74 : vector<8x8xf32>
    %76 = math.exp %75 : vector<8x8xf32>
    %cst_32 = arith.constant dense<0.000000e+00> : vector<8xf32>
    %77 = vector.multi_reduction <add>, %76, %cst_32 [1] : vector<8x8xf32> to vector<8xf32>
    %78 = vector.shape_cast %77 : vector<8xf32> to vector<8x1xf32>
    %79 = tpu.reciprocal %78 : vector<8x1xf32> -> vector<8x1xf32>
    %80 = vector.broadcast %79 : vector<8x1xf32> to vector<8x8xf32>
    %81 = arith.mulf %76, %80 : vector<8x8xf32>
    %cst_33 = arith.constant dense<0.000000e+00> : vector<8x8xf32>
    %82 = tpu.matmul %81, %70, %cst_33 {dimension_numbers = #tpu.dot_dimension_numbers<[1], [0], [0], [1], [0, 0, 1, 1], [], []>} : vector<8x8xf32>, vector<8x8xf32>, vector<8x8xf32> -> vector<8x8xf32>
    %c0_34 = arith.constant 0 : index
    %c3 = arith.constant 3 : index
    %c0_35 = arith.constant 0 : index
    %c0_36 = arith.constant 0 : index
    %83 = vector.load %arg8[%c0_34, %c3, %c0_35, %c0_36] : memref<1x4x8x8xf32, #tpu.memory_space<vmem>>, vector<1x1x8x8xf32>
    %84 = vector.shape_cast %83 : vector<1x1x8x8xf32> to vector<8x8xf32>
    %85 = vector.shape_cast %81 : vector<8x8xf32> to vector<1x1x8x8xf32>
    tpu.vector_store %arg8[%c0_34, %c3, %c0_35, %c0_36], %85 {strides = array<i32>} : memref<1x4x8x8xf32, #tpu.memory_space<vmem>>, vector<1x1x8x8xf32>,
    %86 = tpu.concatenate %28, %46, %64, %82 in 1 : vector<8x8xf32>, vector<8x8xf32>, vector<8x8xf32>, vector<8x8xf32> -> vector<8x32xf32>
    %c0_37 = arith.constant 0 : index
    %c0_38 = arith.constant 0 : index
    %c0_39 = arith.constant 0 : index
    %87 = vector.load %arg7[%c0_37, %c0_38, %c0_39] : memref<1x8x32xf32, #tpu.memory_space<vmem>>, vector<1x8x32xf32>
    %88 = vector.shape_cast %87 : vector<1x8x32xf32> to vector<8x32xf32>
    %89 = vector.shape_cast %86 : vector<8x32xf32> to vector<1x8x32xf32>
    tpu.vector_store %arg7[%c0_37, %c0_38, %c0_39], %89 {strides = array<i32>} : memref<1x8x32xf32, #tpu.memory_space<vmem>>, vector<1x8x32xf32>,
    return
  }
  func.func @transform_0(%arg0: i32, %arg1: i32) -> (i32, i32, i32) {
    %c0_i32 = arith.constant 0 : i32
    %c0_i32_0 = arith.constant 0 : i32
    %c0_i32_1 = arith.constant 0 : i32
    return %arg0, %c0_i32, %c0_i32_0 : i32, i32, i32
  }
  func.func @transform_1(%arg0: i32, %arg1: i32) -> (i32, i32) {
    %c0_i32 = arith.constant 0 : i32
    %c0_i32_0 = arith.constant 0 : i32
    %c0_i32_1 = arith.constant 0 : i32
    return %c0_i32, %c0_i32_0 : i32, i32
  }
  func.func @transform_2(%arg0: i32, %arg1: i32) -> (i32, i32) {
    %c0_i32 = arith.constant 0 : i32
    %c0_i32_0 = arith.constant 0 : i32
    %c0_i32_1 = arith.constant 0 : i32
    return %c0_i32, %c0_i32_0 : i32, i32
  }
  func.func @transform_3(%arg0: i32, %arg1: i32) -> (i32, i32) {
    %c0_i32 = arith.constant 0 : i32
    %c0_i32_0 = arith.constant 0 : i32
    %c0_i32_1 = arith.constant 0 : i32
    return %c0_i32, %c0_i32_0 : i32, i32
  }
  func.func @transform_4(%arg0: i32, %arg1: i32) -> (i32, i32) {
    %c0_i32 = arith.constant 0 : i32
    %c0_i32_0 = arith.constant 0 : i32
    %c0_i32_1 = arith.constant 0 : i32
    return %c0_i32, %c0_i32_0 : i32, i32
  }
  func.func @transform_5(%arg0: i32, %arg1: i32) -> (i32, i32, i32) {
    %c0_i32 = arith.constant 0 : i32
    %c0_i32_0 = arith.constant 0 : i32
    return %arg0, %arg1, %c0_i32 : i32, i32, i32
  }
  func.func @transform_6(%arg0: i32, %arg1: i32) -> (i32, i32, i32, i32) {
    %c0_i32 = arith.constant 0 : i32
    %c0_i32_0 = arith.constant 0 : i32
    %c0_i32_1 = arith.constant 0 : i32
    return %arg0, %c0_i32, %arg1, %c0_i32_0 : i32, i32, i32, i32
  }
}

</mosaic_0001>

<bundles_post_ra>
// kernel: tpu_custom_call.1
= control target key start
LH: loop header
LB: loop body
LE: loop exit
PB: predicated region body
PF: predicated region fallthrough
CT: control target
= control target key end

     0   :  { %s2163_s0 = inlined_call_operand.hbm [shape: f32[2,8,32], index: 0, kind: input, shape index: {}]   ;;  %s2164_s1 = inlined_call_operand.hbm [shape: f32[32,32], index: 1, kind: input, shape index: {}]   ;;  %s2165_s2 = inlined_call_operand.hbm [shape: f32[32,64], index: 2, kind: input, shape index: {}]   ;;  %s2166_s3 = inlined_call_operand.vmem [shape: f32[1,32], index: 3, kind: input, shape index: {}]   ;;  %s2167_s4 = inlined_call_operand.vmem [shape: f32[1,64], index: 4, kind: input, shape index: {}]   ;;  %s2168_s5 = inlined_call_operand.hbm [shape: f32[2,8,32], index: 5, kind: output, shape index: {0}]   ;;  %s2169_s6 = inlined_call_operand.hbm [shape: f32[2,4,8,8], index: 6, kind: output, shape index: {1}]  }
   0x1   :  { %2173 = sst [smem:[#allocation16_spill]] %s2164_s1 }
   0x2   :  { %2174 = sst [smem:[#allocation17_spill]] %s2165_s2 }
   0x3   :  { %12 = vsyncpa [#allocation4], 0 }
   0x4   :  { %14 = vsyncpa [#allocation4 + $0x1], 0 }
   0x5   :  { %15 = vsyncpa [#allocation7], 0 }
   0x6   :  { %16 = vsyncpa [#allocation5], 0 }
   0x7   :  { %18 = vsyncpa [#allocation5 + $0x1], 0 }
   0x8   :  { %19 = vsyncpa [#allocation11], 0 }
   0x9   :  { %21 = vsyncpa [#allocation11 + $0x1], 0  ;;  %s1858_s21 = smov 0   ;;  %s1860_s22 = smov 0  }
   0xa   :  { %s1862_s23 = smov 0   ;;  %s1864_s24 = smov 0  }
   0xb   :  { %s1866_s25 = smov 0   ;;  %s1868_s26 = smov 0  }
   0xc LB: > { %s1359_s27 = sadd.s32 4294967295, %s1801_s26   ;;  %s1360_s28 = sadd.s32 4294967294, %s1801_s26   ;;  %s1801_s26 = sphi %s1868_s26, %s27_s26   ;;  %s1797_s25 = sphi %s1866_s25, %s2193_s25   ;;  %s1793_s24 = sphi %s1864_s24, %s2192_s24   ;;  %s1789_s23 = sphi %s1862_s23, %s2191_s23   ;;  %s1785_s22 = sphi %s1860_s22, %s2190_s22   ;;  %s1781_s21 = sphi %s1858_s21, %s2189_s21  }
   0xd   : > { %p59_p0 = scmp.ne.s32.totalorder %s1785_s22, %s1781_s21  ;;  %p1892_p1 = scmp.eq.s32.totalorder %s1359_s27, 0 }
   0xe   : > { %p1896_p2 = scmp.eq.s32.totalorder %s1359_s27, 1  ;;  %p175_p3 = scmp.eq.s32.totalorder %s1360_s28, 1 }
   0xf   : > { %s2175_s29 = scalar_select %p1892_p1, 1, 0 }
  0x10   : > { %p1902_p4 = por %p1892_p1, %p59_p0  ;;  %p1361_p5 = scmp.ge.s32.totalorder %s1801_s26, 1 }
  0x11   : > { %p1907_p6 = por %p175_p3, %p59_p0  ;;  %p210_p7 = scmp.lt.s32.totalorder %s1801_s26, 3 }
  0x12   : > { %s2177_s7 = scalar_select %p1902_p4, 1, 0 }
  0x13   : > { %s2178_s8 = scalar_select %p1907_p6, 1, 0 }
  0x14   : > { %p1912_p8 = pnand %p1361_p5, %p210_p7  ;;  %s1803_s10 = smov [#allocation6]  }
  0x15   : > { %s222_s11 = sshll.u32 %s1803_s10, 4  ;;  %s1804_s13 = smov [#allocation8]   ;;  %s223_s11 = int_to_ptr.vmem [resolvable:$true] %s222_s11 }
  0x16   : > { %p1502_p9 = pneg %p1912_p8  ;;  %s235_s14 = sshll.u32 %s1804_s13, 4  ;;  %s236_s14 = int_to_ptr.vmem [resolvable:$true] %s235_s14 }
  0x17   : > { %s1618_s15 = scalar_lea.vmem %s223_s11, 512  ;;  %p1626_p5 = scmp.lt.s32.totalorder %s223_s11, %s223_s11 }
  0x18   : > { %p1921_p11 = pnand %p1502_p9, %p1892_p1  ;;  %p1619_p13 = scmp.ne.s32.totalorder %s223_s11, %s1618_s15 }
  0x19   : > { %p1627_p7 = scmp.lt.s32.totalorder %s1618_s15, %s1618_s15 }
  0x1a   : > { %p1609_p12 = pneg %p1921_p11 }
  0x1b   : > { %p1628_p10 = por %p1627_p7, %p1626_p5 }
  0x1c   : > { %p1621_p0 = pnand %p1619_p13, %p1609_p12 }
  0x1e   : > { %p1622_p3 = pneg %p1621_p0 }
  0x20   : > { %p1629_p9 = pnand %p1628_p10, %p1622_p3 }
  0x22   : > { %1632 = shalt.err (!%p1629_p9)
}
  0x23   : > { %s1805_s16 = smov 128   ;;  %s1806_s17 = smov 8  }
  0x24   : > { %s2181_s1 = sld [smem:[#allocation16_spill]]  ;;  %s1644_s20 = scalar_lea.vmem %s236_s14, 512 }
  0x25   : > { %p1645_p6 = scmp.ne.s32.totalorder %s236_s14, %s1644_s20  ;;  %p1652_p1 = scmp.lt.s32.totalorder %s236_s14, %s236_s14 }
  0x26   : > { %p1653_p4 = scmp.lt.s32.totalorder %s1644_s20, %s1644_s20 }
  0x27   : > { %p1647_p13 = pnand %p1645_p6, %p1609_p12 }
  0x28   : > { %p1654_p5 = por %p1653_p4, %p1652_p1 }
  0x29   : > { %p1648_p0 = pneg %p1647_p13 }
  0x2a   : > { %1505 = dma.hbm_to_vmem [thread:$0]  (!%p1921_p11), %s2181_s1, 512, %s223_s11, [#allocation7], %s1805_s16, %s1805_s16, %s1806_s17  }
  0x2b   : > { %p1655_p10 = pnand %p1654_p5, %p1648_p0 }
  0x2d   : > { %1658 = shalt.err (!%p1655_p10)
}
  0x2e   : > { %s2182_s2 = sld [smem:[#allocation17_spill]]  ;;  %s39_s10 = sadd.s32 1, %s1797_s25 }
  0x2f   : > { %s46_s11 = sadd.s32 1, %s1789_s23  ;;  %p41_p1 = scmp.ge.s32.totalorder %s39_s10, 2 }
  0x30   : > { %p53_p4 = scmp.ne.s32.totalorder %s1789_s23, %s1785_s22  ;;  %p54_p6 = scmp.eq.s32.totalorder %s1801_s26, 0 }
  0x31   : > { %p1522_p12 = scmp.lt.s32.totalorder %s1801_s26, 2  ;;  %s2195_s10 = smov (%p41_p1, %s39_s10), 0 }
  0x32   : > { %p55_p3 = por %p54_p6, %p53_p4  ;;  %p1953_p7 = por %p1896_p2, %p53_p4 }
  0x33   : > { %s43_s13 = ssub.s32 %s1797_s25, %s2195_s10  ;;  %s255_s15 = sand.u32 1, %s1789_s23  }
  0x34   : > { %1508 = dma.hbm_to_vmem [thread:$0]  (!%p1921_p11), %s2182_s2, 512, %s236_s14, [#allocation7], %s1805_s16, %s1805_s16, %s1806_s17  }
  0x35   : > { %p44_p9 = scmp.eq.s32.totalorder %s43_s13, 0  ;;  %s1365_s14 = sshll.u32 %s255_s15, 3 }
  0x36   : > { %s1366_s16 = sshll.u32 %s1797_s25, 7  ;;  %s259_s27 = scalar_lea.vmem [#allocation3], %s1365_s14 }
  0x37   : > { %s1962_s17 = scalar_select %p44_p9, %s1789_s23, %s46_s11  }
  0x38   : > { %s264_s20 = scalar_lea.hbm %s2163_s0, %s1366_s16  ;;  %s266_s28 = sshll.u32 %s259_s27, 4  ;;  %s267_s28 = int_to_ptr.vmem [resolvable:$true] %s266_s28 }
  0x39   : > { %p1969_p11 = pnand %p1522_p12, %p55_p3  ;;  %s256_s1 = scalar_lea.sflag [#allocation4], %s255_s15 }
  0x3a   : > { %s1672_s13 = scalar_lea.vmem %s267_s28, 128  ;;  %s1807_s11 = smov [#allocation3]  }
  0x3b   : > { %p1661_p2 = pneg %p1969_p11  ;;  %p1673_p13 = scmp.ne.s32.totalorder %s267_s28, %s1672_s13 }
  0x3c   : > { %s1677_s2 = sshll.u32 %s1807_s11, 4  ;;  %s1678_s2 = int_to_ptr.vmem [resolvable:$false] %s1677_s2 }
  0x3d   : > { %p1675_p0 = pnand %p1673_p13, %p1661_p2  ;;  %s1679_s16 = scalar_lea.vmem %s1678_s2, 256 }
  0x3e   : > { %p1680_p10 = scmp.lt.s32.totalorder %s267_s28, %s1678_s2  ;;  %p1681_p1 = scmp.lt.s32.totalorder %s1679_s16, %s1672_s13 }
  0x3f   : > { %p1676_p5 = pneg %p1675_p0 }
  0x40   : > { %p1682_p4 = por %p1681_p1, %p1680_p10 }
  0x42   : > { %p1683_p6 = pnand %p1682_p4, %p1676_p5 }
  0x44   : > { %1686 = shalt.err (!%p1683_p6)
}
  0x45   : > { %1512 = dma.hbm_to_vmem [thread:$0]  (!%p1969_p11), %s264_s20, 128, %s267_s28, %s256_s1  }
  0x46   : > { %275 = sbr.rel (%p1912_p8) target bundleno = 1257 (0x4e9), region = 40  ;;  %s1980_s15 = sand.u32 (!%p1912_p8), 1, %s1785_s22  }
  0x47   : > { %s1368_s14 = sshll.u32 (!%p1912_p8), %s1980_s15, 3  ;;  %s278_s18 = scalar_lea.sflag (!%p1912_p8), [#allocation4], %s1980_s15 }
  0x48   : > { %s281_s2 = scalar_lea.vmem (!%p1912_p8), [#allocation3], %s1368_s14  ;;  %p2185_p12 = scmp.ne.s32.totalorder (!%p1912_p8), %s2177_s7, 0 }
  0x4b   : > { %1764 = dma.done.wait (%p2185_p12), %s278_s18, 128  }
  0x4c   : > { %1766 = vsyncadd (%p2185_p12), %s278_s18, 4294967168  ;;  %p2186_p3 = scmp.ne.s32.totalorder %s2175_s29, 0 }
  0x4e   : > { %1768 = dma.done.wait (%p2186_p3), [#allocation7], 1024  }
  0x4f   : > { %1770 = vsyncadd (%p2186_p3), [#allocation7], 4294966272  ;;  %v1808_v0 = vmov 0.0   ;;  %vm1809_vm0 = vmmov 0   ;;  %v331_v1 = vld [vmem:[#allocation8 + $0x18] sm:$0xff]  ;;  %v330_v2 = vld [vmem:[#allocation8 + $0x10] sm:$0xff] }
  0x50   : > { %1426 = vmatprep.subr.mxu0 %v1808_v0  ;;  %1434 = vmatprep.mubr.msk.f32.mxu0 %vm1809_vm0, %v1808_v0  ;;  %v421_v3 = vld [vmem:[#allocation6 + $0x18] sm:$0xff]  ;;  %v329_v4 = vld [vmem:[#allocation8 + $0x8] sm:$0xff]  ;;  %v420_v5 = vld [vmem:[#allocation6 + $0x10] sm:$0xff]  ;;  %vm339_vm1 = vcmask 261120   ;;  %vm413_vm2 = vcmask 523264   ;;  %vm504_vm3 = vcmask 64512  }
  0x51   : > { %1437 = vmatprep.subr.mxu1 %v1808_v0  ;;  %1445 = vmatprep.mubr.msk.f32.mxu1 %vm1809_vm0, %v1808_v0  ;;  %v419_v6 = vld [vmem:[#allocation6 + $0x8] sm:$0xff]  ;;  %v328_v7 = vld [vmem:[#allocation8] sm:$0xff]  ;;  %v327_v8 = vld [vmem:[%s281_s2] sm:$0xff]  ;;  %s1810_s19 = smov 112   ;;  %s1811_s20 = smov 120  }
  0x52   : > { %1427 = vmatpush3.msra.mxu0 %v331_v1  ;;  %1438 = vmatpush3.msra.mxu1 %v421_v3  ;;  %v418_v9 = vld [vmem:[#allocation6] sm:$0xff]  ;;  %v1373_v10 = vld [vmem:[%s2167_s4] ss:$0 sm:$0xff]  ;;  %s1812_s27 = smov 104   ;;  %s1813_s28 = smov 96  }
  0x53   : > { %1428 = vmatprep.subr.mxu0 %v1808_v0  ;;  %1439 = vmatprep.subr.mxu1 %v1808_v0  ;;  %v1375_v16 = vld [vmem:[%s2166_s3] ss:$0 sm:$0xff]  ;;  %s1814_s30 = smov 80   ;;  %s1815_s13 = smov 72  }
  0x54   : > { %1429 = vmatpush3.msra.mxu0 %v330_v2  ;;  %1440 = vmatpush3.msra.mxu1 %v420_v5  ;;  %s1816_s11 = smov 88   ;;  %s1372_s16 = sshll.u32 %s1980_s15, 5 }
  0x55   : > { %1430 = vmatprep.subr.mxu0 %v1808_v0  ;;  %1441 = vmatprep.subr.mxu1 %v1808_v0  ;;  %s2058_s18 = scalar_lea.vmem [#allocation10], %s1372_s16  ;;  %s1399_s2 = sshll.u32 %s1793_s24, 9 }
  0x56   : > { %1431 = vmatpush3.msra.mxu0 %v329_v4  ;;  %1442 = vmatpush3.msra.mxu1 %v419_v6  ;;  %s1222_s1 = sshll.u32 %s2058_s18, 4  ;;  %s1817_s29 = smov 8   ;;  %s2087_s1 = int_to_ptr.vmem [resolvable:$true] %s1222_s1 }
  0x57   : > { %1432 = vmatprep.subr.mxu0 %v1808_v0  ;;  %1443 = vmatprep.subr.mxu1 %v1808_v0 }
  0x58   : > { %1433 = vmatpush3.msra.mxu0 %v328_v7  ;;  %1444 = vmatpush3.msra.mxu1 %v418_v9 }
  0x59   : > { %1435 = vmatmul.mubr.msk.f32.vlgmr.msra.gmra.mxu0 %vm339_vm1, %v327_v8  ;;  %1446 = vmatmul.mubr.msk.f32.vlgmr.msra.gmra.mxu1 %vm339_vm1, %v327_v8 }
  0x5a   : > { %1448 = vmatprep.subr.mxu0 %v1808_v0  ;;  %1450 = vmatprep.mubr.msk.f32.mxu0 %vm1809_vm0, %v1808_v0 }
  0x5b   : > { %1453 = vmatprep.subr.mxu1 %v1808_v0  ;;  %1455 = vmatprep.mubr.msk.f32.mxu1 %vm1809_vm0, %v1808_v0 }
 0x119   : > { %v409_v11 = vpop.f32.mrf.mxu0  ;;  %v499_v13 = vpop.f32.mrf.mxu1 }
 0x11a   : > { %v410_v12 = vadd.f32 %v1373_v10, %v409_v11  ;;  %v500_v18 = vadd.f32 %v1375_v16, %v499_v13 }
 0x11b   : > { %v1436_v14 = vpop.f32.mrf.mxu0  ;;  %v1447_v15 = vpop.f32.mrf.mxu1 }
 0x11c   : > { %414 = vst.msk [vmem:[#allocation2] sm:$0xff] %vm413_vm2, %v410_v12 }
 0x123   : > { %v2020_v17 = vld [vmem:[#allocation2] sm:$0xff] }
 0x124   : > { %838 = vrot.lane.b32.xlu1 %v2020_v17, %s1810_s19  ;;  %671 = vrot.lane.b32.xlu0 %v2020_v17, %s1811_s20 }
 0x125   : > { %1449 = vmatpush3.xpose.msk.msra.mxu0 %vm504_vm3, %v2020_v17 }
 0x126   : > { %1458 = vmatprep.subr.mxu0 %v1808_v0 }
 0x128   : > { %1451 = vmatmul.mubr.msk.f32.vlgmr.msra.gmra.mxu0 %vm504_vm3, %v500_v18  ;;  %836 = vrot.lane.b32.xlu1 %v500_v18, %s1810_s19  ;;  %s2085_s19 = scalar_lea.hbm %s2169_s6, %s1399_s2 }
 0x129   : > { %669 = vrot.lane.b32.xlu0 %v500_v18, %s1811_s20  ;;  %1460 = vmatprep.mubr.msk.f32.mxu0 %vm1809_vm0, %v1808_v0  ;;  %s1194_s20 = scalar_lea.sflag [#allocation11], %s1980_s15 }
 0x12c   : > { %1003 = vrot.lane.b32.xlu1 %v500_v18, %s1812_s27 }
 0x12d   : > { %1005 = vrot.lane.b32.xlu0 %v2020_v17, %s1812_s27  ;;  %s1687_s27 = scalar_lea.vmem %s2087_s1, 512 }
 0x12e   : > { %p1688_p8 = scmp.ne.s32.totalorder %s2087_s1, %s1687_s27 }
 0x130   : > { %p1689_p9 = pnand %p1688_p8, %p1953_p7 }
 0x132   : > { %p1690_p11 = pneg %p1689_p9 }
 0x196   : > { %v672_v19 = vpop.permute.xlu0 %671  ;;  %v839_v20 = vpop.permute.xlu1 %838 }
 0x197   : > { %1459 = vmatpush3.xpose.msk.msra.mxu0 %vm504_vm3, %v672_v19 }
 0x198   : > { %1468 = vmatprep.subr.mxu0 %v1808_v0 }
 0x19a   : > { %v837_v22 = vpop.permute.xlu1 %836 }
 0x19b   : > { %v670_v21 = vpop.permute.xlu0 %669 }
 0x19c   : > { %1461 = vmatmul.mubr.msk.f32.vlgmr.msra.gmra.mxu0 %vm504_vm3, %v670_v21 }
 0x19d   : > { %1469 = vmatpush3.xpose.msk.msra.mxu0 %vm504_vm3, %v839_v20  ;;  %1470 = vmatprep.mubr.msk.f32.mxu0 %vm1809_vm0, %v1808_v0 }
 0x19e   : > { %1478 = vmatprep.subr.mxu0 %v1808_v0  ;;  %v1004_v24 = vpop.permute.xlu1 %1003 }
 0x19f   : > { %v1006_v23 = vpop.permute.xlu0 %1005 }
 0x1a0   : > { %1471 = vmatmul.mubr.msk.f32.vlgmr.msra.gmra.mxu0 %vm504_vm3, %v837_v22 }
 0x1a1   : > { %1479 = vmatpush3.xpose.msk.msra.mxu0 %vm504_vm3, %v1006_v23  ;;  %1480 = vmatprep.mubr.msk.f32.mxu0 %vm1809_vm0, %v1808_v0 }
 0x1a4   : > { %1481 = vmatmul.mubr.msk.f32.vlgmr.msra.gmra.mxu0 %vm504_vm3, %v1004_v24 }
 0x1e8   : > { %v577_v25 = vpop.f32.mrf.mxu0 }
 0x1e9   : > { %v581_v26 = vsel %vm504_vm3, %v577_v25, -inf }
 0x1ea   : > { %582 = vmax.xlane.f32.xlu0 %v581_v26  ;;  %v1452_v27 = vpop.f32.mrf.mxu0 }
 0x25c   : > { %v743_v28 = vpop.f32.mrf.mxu0 }
 0x25d   : > { %v747_v29 = vsel %vm504_vm3, %v743_v28, -inf }
 0x25e   : > { %748 = vmax.xlane.f32.xlu1 %v747_v29  ;;  %v1462_v30 = vpop.f32.mrf.mxu0 }
 0x260   : > { %v910_v31 = vpop.f32.mrf.mxu0 }
 0x261   : > { %v914_v32 = vsel %vm504_vm3, %v910_v31, -inf }
 0x262   : > { %915 = vmax.xlane.f32.xlu0 %v914_v32  ;;  %v1472_v33 = vpop.f32.mrf.mxu0 }
 0x264   : > { %v1077_v34 = vpop.f32.mrf.mxu0 }
 0x265   : > { %v1081_v35 = vsel %vm504_vm3, %v1077_v34, -inf }
 0x266   : > { %1082 = vmax.xlane.f32.xlu0 %v1081_v35  ;;  %v1482_v36 = vpop.f32.mrf.mxu0 }
 0x26f   : > { %592 = vrot.lane.b32.xlu1 %v2020_v17, %s1813_s28  ;;  %s1818_s28 = smov [#allocation10]  }
 0x273   : > { %v583_v37 = vpop.xlane.xlu0 %582 }
 0x274   : > { %v584_v38 = vsub.f32 %v577_v25, %v583_v37 }
 0x276   : > { %v585_v39 = vmul.f32 1.442695, %v584_v38 }
 0x278   : > { %1591 = vpow2.f32 %v585_v39 }
 0x285   : > { %v1592_v40 = vpop.eup %1591 }
 0x286   : > { %v587_v41 = vsel %vm504_vm3, %v1592_v40, 0.0 }
 0x293   : > { %588 = vadd.xlane.f32.xlu1 %v587_v41 }
 0x2e7   : > { %v749_v42 = vpop.xlane.xlu1 %748 }
 0x2e8   : > { %v750_v43 = vsub.f32 %v743_v28, %v749_v42 }
 0x2ea   : > { %v751_v44 = vmul.f32 1.442695, %v750_v43 }
 0x2eb   : > { %v593_v45 = vpop.permute.xlu1 %592  ;;  %v916_v46 = vpop.xlane.xlu0 %915 }
 0x2ec   : > { %1593 = vpow2.f32 %v751_v44  ;;  %v917_v47 = vsub.f32 %v910_v31, %v916_v46  ;;  %1454 = vmatpush3.msra.mxu1 %v593_v45 }
 0x2ed   : > { %1463 = vmatprep.subr.mxu1 %v1808_v0 }
 0x2ee   : > { %v918_v48 = vmul.f32 1.442695, %v917_v47 }
 0x2ef   : > { %v1083_v49 = vpop.xlane.xlu0 %1082 }
 0x2f0   : > { %1595 = vpow2.f32 %v918_v48  ;;  %v1084_v50 = vsub.f32 %v1077_v34, %v1083_v49 }
 0x2f2   : > { %v1085_v51 = vmul.f32 1.442695, %v1084_v50 }
 0x2f4   : > { %1597 = vpow2.f32 %v1085_v51 }
 0x2f9   : > { %v1594_v52 = vpop.eup %1593 }
 0x2fa   : > { %v753_v53 = vsel %vm504_vm3, %v1594_v52, 0.0 }
 0x2fb   : > { %754 = vadd.xlane.f32.xlu0 %v753_v53 }
 0x2fd   : > { %v1596_v54 = vpop.eup %1595 }
 0x2fe   : > { %v920_v55 = vsel %vm504_vm3, %v1596_v54, 0.0 }
 0x2ff   : > { %921 = vadd.xlane.f32.xlu1 %v920_v55 }
 0x301   : > { %v1598_v56 = vpop.eup %1597 }
 0x302   : > { %v1087_v57 = vsel %vm504_vm3, %v1598_v56, 0.0 }
 0x303   : > { %1088 = vadd.xlane.f32.xlu0 %v1087_v57 }
 0x310   : > { %925 = vrot.lane.b32.xlu1 %v2020_v17, %s1814_s30  ;;  %s1691_s30 = sshll.u32 %s1818_s28, 4  ;;  %s1692_s30 = int_to_ptr.vmem [resolvable:$false] %s1691_s30 }
 0x311   : > { %p1694_p2 = scmp.lt.s32.totalorder %s2087_s1, %s1692_s30 }
 0x314   : > { %1092 = vrot.lane.b32.xlu1 %v2020_v17, %s1815_s13  ;;  %s1693_s13 = scalar_lea.vmem %s1692_s30, 1024 }
 0x315   : > { %p1695_p13 = scmp.lt.s32.totalorder %s1693_s13, %s1687_s27 }
 0x317   : > { %p1696_p0 = por %p1695_p13, %p1694_p2 }
 0x319   : > { %758 = vrot.lane.b32.xlu0 %v2020_v17, %s1816_s11  ;;  %p1697_p5 = pnand %p1696_p0, %p1690_p11 }
 0x31c   : > { %v589_v58 = vpop.xlane.xlu1 %588 }
 0x31d   : > { %1599 = vrcp.f32 %v589_v58 }
 0x32a   : > { %v1600_v59 = vpop.eup %1599 }
 0x32b   : > { %v591_v60 = vmul.f32 %v1600_v59, %v1592_v40 }
 0x32d   : > { %1456 = vmatmul.mubr.msk.f32.vlgmr.msra.gmra.mxu1 %vm504_vm3, %v591_v60  ;;  %668 = vst.msk [vmem:[%s2058_s18] sm:$0xff] %vm504_vm3, %v591_v60 }
 0x32e   : > { %1465 = vmatprep.mubr.msk.f32.mxu1 %vm1809_vm0, %v1808_v0 }
 0x384   : > { %v755_v61 = vpop.xlane.xlu0 %754 }
 0x385   : > { %1601 = vrcp.f32 %v755_v61 }
 0x388   : > { %v922_v62 = vpop.xlane.xlu1 %921 }
 0x389   : > { %1603 = vrcp.f32 %v922_v62 }
 0x38c   : > { %v1089_v63 = vpop.xlane.xlu0 %1088  ;;  %v926_v3 = vpop.permute.xlu1 %925 }
 0x38d   : > { %1605 = vrcp.f32 %v1089_v63 }
 0x390   : > { %v759_v1 = vpop.permute.xlu0 %758  ;;  %v1093_v7 = vpop.permute.xlu1 %1092 }
 0x391   : > { %1464 = vmatpush3.msra.mxu1 %v759_v1 }
 0x392   : > { %v1602_v2 = vpop.eup %1601  ;;  %1473 = vmatprep.subr.mxu1 %v1808_v0 }
 0x393   : > { %v757_v4 = vmul.f32 %v1602_v2, %v1594_v52 }
 0x395   : > { %1466 = vmatmul.mubr.msk.f32.vlgmr.msra.gmra.mxu1 %vm504_vm3, %v757_v4  ;;  %1383 = vst.msk [vmem:[%s2058_s18 + $0x8] sm:$0xff] %vm504_vm3, %v757_v4 }
 0x396   : > { %v1604_v5 = vpop.eup %1603  ;;  %1474 = vmatpush3.msra.mxu1 %v926_v3  ;;  %1475 = vmatprep.mubr.msk.f32.mxu1 %vm1809_vm0, %v1808_v0 }
 0x397   : > { %1483 = vmatprep.subr.mxu1 %v1808_v0  ;;  %v924_v6 = vmul.f32 %v1604_v5, %v1596_v54 }
 0x399   : > { %1476 = vmatmul.mubr.msk.f32.vlgmr.msra.gmra.mxu1 %vm504_vm3, %v924_v6  ;;  %1387 = vst.msk [vmem:[%s2058_s18 + $0x10] sm:$0xff] %vm504_vm3, %v924_v6 }
 0x39a   : > { %v1606_v8 = vpop.eup %1605  ;;  %1484 = vmatpush3.msra.mxu1 %v1093_v7  ;;  %1485 = vmatprep.mubr.msk.f32.mxu1 %vm1809_vm0, %v1808_v0 }
 0x39b   : > { %v1091_v9 = vmul.f32 %v1606_v8, %v1598_v56 }
 0x39d   : > { %1486 = vmatmul.mubr.msk.f32.vlgmr.msra.gmra.mxu1 %vm504_vm3, %v1091_v9  ;;  %1391 = vst.msk [vmem:[%s2058_s18 + $0x18] sm:$0xff] %vm504_vm3, %v1091_v9 }
 0x3ed   : > { %v664_v10 = vpop.f32.mrf.mxu1 }
 0x3ef   : > { %v1457_v11 = vpop.f32.mrf.mxu1 }
 0x455   : > { %v830_v12 = vpop.f32.mrf.mxu1 }
 0x456   : > { %1171 = vrot.lane.b32.xlu0 %v830_v12, %s1817_s29 }
 0x457   : > { %v1467_v0 = vpop.f32.mrf.mxu1 }
 0x458   : > { %1700 = shalt.err (!%p1697_p5)
}
 0x459   : > { %s1701_s11 = scalar_lea.hbm %s2085_s19, 512  ;;  %s1705_s2 = scalar_lea.hbm %s2169_s6, 1024 }
 0x45a   : > { %p1702_p10 = scmp.ne.s32.totalorder %s2085_s19, %s1701_s11  ;;  %p1706_p6 = scmp.lt.s32.totalorder %s2085_s19, %s2169_s6 }
 0x45b   : > { %p1707_p12 = scmp.lt.s32.totalorder %s1705_s2, %s1701_s11 }
 0x45c   : > { %p1703_p1 = pnand %p1702_p10, %p1953_p7 }
 0x45d   : > { %p1708_p3 = por %p1707_p12, %p1706_p6 }
 0x45e   : > { %p1704_p4 = pneg %p1703_p1 }
 0x460   : > { %p1709_p8 = pnand %p1708_p3, %p1704_p4 }
 0x462   : > { %1712 = shalt.err (!%p1709_p8)
}
 0x463   : > { %s1819_s27 = smov 128   ;;  %v997_v13 = vpop.f32.mrf.mxu1  ;;  %s1820_s28 = smov 16   ;;  %vm1183_vm4 = vcmask 130048   ;;  %vm1185_vm5 = vcmask 195584  }
 0x464   : > { %1499 = dma.vmem_to_hbm [thread:$0]  (%p1953_p7), %s2087_s1, 512, %s2085_s19, %s1194_s20, %s1819_s27, %s1819_s27, %s1817_s29  }
 0x465   : > { %1175 = vrot.lane.b32.xlu1 %v997_v13, %s1820_s28  ;;  %v1477_v14 = vpop.f32.mrf.mxu1  ;;  %s1821_s30 = smov 24   ;;  %s1394_s13 = sshll.u32 %s1793_s24, 7 }
 0x466   : > { %s315_s11 = scalar_lea.vmem [#allocation9], %s1368_s14  ;;  %s2120_s19 = scalar_lea.hbm %s2168_s5, %s1394_s13 }
 0x467   : > { %v1164_v15 = vpop.f32.mrf.mxu1  ;;  %s1208_s16 = sshll.u32 %s315_s11, 4  ;;  %s1189_s20 = scalar_lea.sflag [#allocation5], %s1980_s15  ;;  %s1209_s16 = int_to_ptr.vmem [resolvable:$true] %s1208_s16 }
 0x468   : > { %1179 = vrot.lane.b32.xlu0 %v1164_v15, %s1821_s30  ;;  %s1713_s18 = scalar_lea.vmem %s1209_s16, 128  ;;  %s1822_s24 = smov [#allocation9]  }
 0x469   : > { %v1487_v16 = vpop.f32.mrf.mxu1  ;;  %p1714_p9 = scmp.ne.s32.totalorder %s1209_s16, %s1713_s18  ;;  %s1717_s14 = sshll.u32 %s1822_s24, 4  ;;  %s1718_s14 = int_to_ptr.vmem [resolvable:$false] %s1717_s14 }
 0x46a   : > { %s1719_s2 = scalar_lea.vmem %s1718_s14, 256  ;;  %p1720_p13 = scmp.lt.s32.totalorder %s1209_s16, %s1718_s14 }
 0x46b   : > { %p1715_p11 = pnand %p1714_p9, %p1953_p7  ;;  %p1721_p0 = scmp.lt.s32.totalorder %s1719_s2, %s1713_s18 }
 0x46d   : > { %p1716_p2 = pneg %p1715_p11  ;;  %p1722_p5 = por %p1721_p0, %p1720_p13 }
 0x46f   : > { %p1723_p10 = pnand %p1722_p5, %p1716_p2 }
 0x4c8   : > { %v1172_v17 = vpop.permute.xlu0 %1171 }
 0x4c9   : > { %v1182_v19 = vsel %vm504_vm3, %v664_v10, %v1172_v17 }
 0x4d7   : > { %v1176_v18 = vpop.permute.xlu1 %1175 }
 0x4d8   : > { %v1184_v20 = vsel %vm1183_vm4, %v1182_v19, %v1176_v18 }
 0x4da   : > { %v1180_v21 = vpop.permute.xlu0 %1179 }
 0x4db   : > { %v1186_v22 = vsel %vm1185_vm5, %v1184_v20, %v1180_v21 }
 0x4dc   : > { %1187 = vst.msk [vmem:[%s315_s11] sm:$0xff] %vm339_vm1, %v1186_v22 }
 0x4dd   : > { %1726 = shalt.err (!%p1723_p10)
}
 0x4de   : > { %s1727_s7 = scalar_lea.hbm %s2120_s19, 128  ;;  %s1731_s27 = scalar_lea.hbm %s2168_s5, 256 }
 0x4df   : > { %p1728_p1 = scmp.ne.s32.totalorder %s2120_s19, %s1727_s7  ;;  %p1732_p12 = scmp.lt.s32.totalorder %s2120_s19, %s2168_s5 }
 0x4e0   : > { %p1733_p3 = scmp.lt.s32.totalorder %s1731_s27, %s1727_s7 }
 0x4e1   : > { %p1729_p4 = pnand %p1728_p1, %p1953_p7 }
 0x4e2   : > { %p1734_p8 = por %p1733_p3, %p1732_p12 }
 0x4e3   : > { %p1730_p6 = pneg %p1729_p4 }
 0x4e5   : > { %p1735_p9 = pnand %p1734_p8, %p1730_p6 }
 0x4e7   : > { %1738 = shalt.err (!%p1735_p9)
}
 0x4e8   : > { %1498 = dma.vmem_to_hbm [thread:$0]  (%p1953_p7), %s1209_s16, 128, %s2120_s19, %s1189_s20  }
 0x4e9 PF: > { %s1237_s13 = sand.u32 1, %s1781_s21   ;;  %p2187_p11 = scmp.ne.s32.totalorder %s2178_s8, 0 }
 0x4ea   : > { %p2188_p2 = scmp.ge.s32.totalorder %s1801_s26, 2  ;;  %s1238_s11 = scalar_lea.sflag [#allocation5], %s1237_s13 }
 0x4ec   : > { %p1514_p13 = pnand %p2188_p2, %p2187_p11 }
 0x4ee   : > { %p1515_p0 = pneg %p1514_p13 }
 0x4f0   : > { %1772 = dma.done.wait (%p1515_p0), %s1238_s11, 128  }
 0x4f1   : > { %1774 = vsyncadd (%p1515_p0), %s1238_s11, 4294967168  ;;  %s1247_s1 = scalar_lea.sflag [#allocation11], %s1237_s13 }
 0x4f2   : > { %1776 = dma.done.wait (%p1515_p0), %s1247_s1, 512  }
 0x4f3   : > { %1778 = vsyncadd (%p1515_p0), %s1247_s1, 4294966784  ;;  %s27_s26 = sadd.s32 1, %s1801_s26   ;;  %s2189_s21 = smov %s1785_s22 }
 0x4f4   : > { %p24_p5 = scmp.ge.s32.totalorder %s27_s26, 4   ;;  %s2190_s22 = smov %s1789_s23 }
 0x4f5   : > { %s2191_s23 = smov %s1962_s17  ;;  %s2192_s24 = smov %s1797_s25 }
 0x4f6   : > { %s2193_s25 = smov %s2195_s10  ;;  %26 = sbr.rel (!%p24_p5) target bundleno = 12 (0xc), region = 118 }
 0x4fb   :  { %1252 = vsyncpa [#allocation4], 1 }
 0x4fc   :  { %1254 = vsyncpa [#allocation4 + $0x1], 1 }
 0x4fd   :  { %1255 = vsyncpa [#allocation7], 1 }
 0x4fe   :  { %1256 = vsyncpa [#allocation5], 1 }
 0x4ff   :  { %1258 = vsyncpa [#allocation5 + $0x1], 1 }
 0x500   :  { %1259 = vsyncpa [#allocation11], 1 }
 0x501   :  { %1261 = vsyncpa [#allocation11 + $0x1], 1 }

</bundles_post_ra>
